<compile_context>
chip_gen: v7x
topology: tpu7x:2x2x1
jax: 0.10.0
libtpu: 0.0.40
codegen_flags: <defaults>
</compile_context>

<pallas_src>
import jax
import jax.numpy as jnp
from jax.experimental import pallas as pl
from jax.experimental.pallas import tpu as pltpu


# --------------------------------------------------------------------------- #
# Small static helpers (run at trace time only).
# --------------------------------------------------------------------------- #
def _round_up(x, m):
    return -(-x // m) * m


def _tile_vmem_bytes(shape, itemsize):
    """Real VMEM footprint of one buffered block: last dim pads to 128 lanes,
    second-to-last to 8 sublanes, leading dims multiply whole tiles."""
    if len(shape) == 1:
        return _round_up(int(shape[0]), 128) * itemsize * 8
    lead = 1
    for s in shape[:-2]:
        lead *= int(s)
    return (lead * _round_up(int(shape[-2]), 8)
            * _round_up(int(shape[-1]), 128) * itemsize)


def _divisors(n):
    return [d for d in range(1, n + 1) if n % d == 0]


def _vmem_limit_bytes():
    """Scoped-VMEM limit: ~3/4 of physical VMEM, clamped to [32, 96] MiB.
    -> ~96 MiB on v5e/v6e (128 MiB physical), ~48 MiB on v7x (64 MiB)."""
    try:
        cap = int(pltpu.get_tpu_info().vmem_capacity_bytes)
    except Exception:
        cap = 128 * 1024 * 1024
    return max(32 * 1024 * 1024, min(cap * 3 // 4, 96 * 1024 * 1024))


def _choose_tiles(B, D, M, H, P2, w_itemsize, vmem_limit):
    """Pick (TB, TD) = (batch rows, query rows) handled per grid step.

    Accounting includes the 128-lane padding of the (., 2)-shaped trunk-coord
    and output blocks, double-buffering of streamed blocks, single-buffered
    weights and the major in-kernel intermediates.  Prefers >=2 total grid
    steps so the "parallel" batch axis can be split across both v7x cores.
    """
    f32 = 4
    P_pad = P2 // 2
    weights = (_tile_vmem_bytes((M, H), w_itemsize)
               + _tile_vmem_bytes((1, H), f32)
               + _tile_vmem_bytes((H, P2), w_itemsize)
               + _tile_vmem_bytes((1, P2), f32)
               + _tile_vmem_bytes((2, H), w_itemsize)
               + _tile_vmem_bytes((1, H), f32)
               + _tile_vmem_bytes((H, P2), w_itemsize)
               + _tile_vmem_bytes((1, P2), f32))

    def step_bytes(tb, td):
        streamed = 2 * (_tile_vmem_bytes((tb, M), f32)            # branch inputs
                        + tb * _tile_vmem_bytes((td, 2), f32)     # trunk coords (lane-padded)
                        + tb * _tile_vmem_bytes((td, 2), f32))    # output       (lane-padded)
        scratch = _tile_vmem_bytes((tb, P2), f32)                 # cached branch outputs
        inter = (tb * _tile_vmem_bytes((td, H), f32)              # trunk hidden
                 + _tile_vmem_bytes((td, P2), f32)                # per-row trunk output
                 + 2 * _tile_vmem_bytes((td, P_pad), f32))        # per-row products
        return weights + streamed + scratch + inter

    budget = int(vmem_limit * 0.75)
    # block-shape rule: 2nd-to-last dim must be a multiple of 8 or the full dim.
    tb_cands = [d for d in _divisors(B) if (d % 8 == 0 or d == B) and d <= 64] or [B]
    td_cands = [d for d in _divisors(D) if d % 8 == 0 or d == D] or [D]
    pairs = [(tb, td) for tb in tb_cands for td in td_cands]
    feasible = [p for p in pairs if step_bytes(*p) <= budget]
    if not feasible:
        # TODO(synk): very large weights / row counts — fall back to the
        # smallest tile and let the compiler's scoped-VMEM limit arbitrate.
        feasible = [min(pairs, key=lambda p: step_bytes(*p))]
    multi = [p for p in feasible if (B // p[0]) * (D // p[1]) >= 2]
    pool = multi or feasible
    return max(pool, key=lambda p: (p[0] * p[1], p[1]))


# --------------------------------------------------------------------------- #
# Kernel.
# --------------------------------------------------------------------------- #
def deeponet_kernel(bx_ref, tx_ref,
                    w1b_ref, b1b_ref, w2b_ref, b2b_ref,
                    w1t_ref, b1t_ref, w2t_ref, b2t_ref,
                    out_ref, bo_sc):
    TB, TD, Cc = tx_ref.shape
    P2 = w2b_ref.shape[1]
    P_pad = P2 // 2
    wdt = w1b_ref.dtype                      # f32 (default) or bf16 packed weights

    # ---- branch MLP: once per batch tile (j == 0), cached in VMEM scratch ----
    @pl.when(pl.program_id(1) == 0)
    def _():
        bh = jnp.maximum(
            jnp.dot(bx_ref[...].astype(wdt), w1b_ref[...],
                    preferred_element_type=jnp.float32) + b1b_ref[...], 0.0)
        bo_sc[...] = (jnp.dot(bh.astype(wdt), w2b_ref[...],
                              preferred_element_type=jnp.float32) + b2b_ref[...])

    # ---- trunk layer 1 on the VPU (contraction depth Cc == 2 wastes the MXU) -
    tx = tx_ref[...]                                   # (TB, TD, Cc) f32
    w1t = w1t_ref[...].astype(jnp.float32)             # (Cc, H)
    acc = tx[..., 0:1] * w1t[0:1, :] + b1t_ref[...]    # (TB, TD, H)
    for c in range(1, Cc):                             # static, tiny loop
        acc = acc + tx[..., c:c + 1] * w1t[c:c + 1, :]
    th = jnp.maximum(acc, 0.0)

    # ---- trunk layer 2 + 'fpz,fdpz->fdz' contraction, one batch row at a time
    w2t = w2t_ref[...]
    b2t = b2t_ref[...]
    for f in range(TB):                                # static unroll (TB <= 64)
        to = (jnp.dot(th[f].astype(wdt), w2t,
                      preferred_element_type=jnp.float32) + b2t)       # (TD, P2)
        b0 = bo_sc[f:f + 1, 0:P_pad]                   # (1, P_pad) sublane bcast
        b1 = bo_sc[f:f + 1, P_pad:P2]
        # padded P lanes of w2*/b2* are exactly zero, so they add nothing.
        s0 = jnp.sum(to[:, 0:P_pad] * b0, axis=-1, keepdims=True)      # (TD, 1)
        s1 = jnp.sum(to[:, P_pad:P2] * b1, axis=-1, keepdims=True)
        out_ref[f] = jnp.concatenate([s0, s1], axis=-1)  # one fused store / row


# --------------------------------------------------------------------------- #
# One-time parameter packing (outside the hot path).
# --------------------------------------------------------------------------- #
def prepare_params(params, weights_dtype=jnp.float32):
    """Re-pack the PyTorch-layout weights.

    The (H, 2P) second-layer weights store z interleaved (column p*2+z, i.e.
    torch's reshape(..., -1, 2)).  De-interleave into [z=0 block | z=1 block],
    each zero-padded to a multiple of 128 lanes, so each net does one fused MXU
    pass and the in-kernel z slices are free, lane-aligned static slices.

    `weights_dtype=jnp.bfloat16` stores matmul weights in bf16 (MXU-native on
    v6e/v7x, 2x the f32 rate on v5e, half the weight DMA/VMEM); biases stay f32
    and accumulation is always f32.
    """
    f32 = jnp.float32
    P = params['w2b'].shape[1] // 2
    P_pad = _round_up(P, 128)

    def pack_w2(w):
        w = w.astype(f32)
        out = jnp.zeros((w.shape[0], 2 * P_pad), f32)
        out = out.at[:, :P].set(w[:, 0::2])
        out = out.at[:, P_pad:P_pad + P].set(w[:, 1::2])
        return out.astype(weights_dtype)

    def pack_b2(b):
        b = b.astype(f32)
        out = jnp.zeros((1, 2 * P_pad), f32)
        out = out.at[0, :P].set(b[0::2])
        out = out.at[0, P_pad:P_pad + P].set(b[1::2])
        return out

    return {
        'w1b': params['w1b'].astype(weights_dtype),
        'b1b': params['b1b'].reshape(1, -1).astype(f32),
        'w2b': pack_w2(params['w2b']),
        'b2b': pack_b2(params['b2b']),
        'w1t': params['w1t'].astype(weights_dtype),
        'b1t': params['b1t'].reshape(1, -1).astype(f32),
        'w2t': pack_w2(params['w2t']),
        'b2t': pack_b2(params['b2t']),
    }


# --------------------------------------------------------------------------- #
# Host wrapper.
# --------------------------------------------------------------------------- #
@jax.jit
def deeponet_forward(branch_inputs, trunk_inputs, packed):
    B = branch_inputs.shape[0]
    D, Cc = trunk_inputs.shape[1], trunk_inputs.shape[2]
    bx = branch_inputs.reshape(B, -1).astype(jnp.float32)   # (B, M)
    tx = trunk_inputs.astype(jnp.float32)                   # (B, D, Cc)
    M = bx.shape[1]
    H = packed['w1b'].shape[1]
    P2 = packed['w2b'].shape[1]                              # 2 * P_pad
    P_pad = P2 // 2
    w_itemsize = jnp.dtype(packed['w1b'].dtype).itemsize

    vmem_limit = _vmem_limit_bytes()
    TB, TD = _choose_tiles(B, D, M, H, P2, w_itemsize, vmem_limit)
    grid = (B // TB, D // TD)

    io_map = lambda i, j: (i, j, 0)
    bx_map = lambda i, j: (i, 0)
    const = lambda i, j: (0, 0)

    def weight_spec(shape):
        # Weights never change block index -> single-buffer them (halves VMEM).
        try:
            return pl.BlockSpec(shape, const, pipeline_mode=pl.Buffered(1))
        except TypeError:       # older jax without pipeline_mode
            return pl.BlockSpec(shape, const)

    jsteps = D // TD
    flops = ((2 * M * H + 2 * H * P2) * B * jsteps           # branch (recomputed per j)
             + 2 * B * D * Cc * H + 2 * B * D * H * P2       # trunk
             + 4 * B * D * P_pad)                            # contraction
    bytes_accessed = (4 * (B * M + B * D * Cc + B * D * 2)
                      + w_itemsize * (M * H + 2 * H * P2 + Cc * H)
                      + 4 * (2 * H + 2 * P2))

    return pl.pallas_call(
        deeponet_kernel,
        out_shape=jax.ShapeDtypeStruct((B, D, 2), jnp.float32),
        grid_spec=pltpu.PrefetchScalarGridSpec(
            num_scalar_prefetch=0,
            grid=grid,
            in_specs=[
                pl.BlockSpec((TB, M), bx_map),        # branch inputs
                pl.BlockSpec((TB, TD, Cc), io_map),   # trunk coordinates
                weight_spec((M, H)),                  # w1b
                weight_spec((1, H)),                  # b1b
                weight_spec((H, P2)),                 # w2b (z-packed, lane-padded)
                weight_spec((1, P2)),                 # b2b
                weight_spec((Cc, H)),                 # w1t
                weight_spec((1, H)),                  # b1t
                weight_spec((H, P2)),                 # w2t (z-packed, lane-padded)
                weight_spec((1, P2)),                 # b2t
            ],
            out_specs=pl.BlockSpec((TB, TD, 2), io_map),
            scratch_shapes=[pltpu.VMEM((TB, P2), jnp.float32)],  # cached branch out
        ),
        compiler_params=pltpu.CompilerParams(
            dimension_semantics=("parallel", "arbitrary"),
            vmem_limit_bytes=vmem_limit,
        ),
        cost_estimate=pl.CostEstimate(
            flops=flops, transcendentals=0, bytes_accessed=bytes_accessed),
    )(bx, tx,
      packed['w1b'], packed['b1b'], packed['w2b'], packed['b2b'],
      packed['w1t'], packed['b1t'], packed['w2t'], packed['b2t'])


def deeponet_reference(branch_inputs, trunk_inputs, params):
    """Pure-JAX transliteration of the PyTorch forward (for verification)."""
    B = branch_inputs.shape[0]
    x = branch_inputs.reshape(B, -1)
    bh = jax.nn.relu(x @ params['w1b'] + params['b1b'])
    bo = (bh @ params['w2b'] + params['b2b']).reshape(B, -1, 2)
    th = jax.nn.relu(trunk_inputs @ params['w1t'] + params['b1t'])
    to = (th @ params['w2t'] + params['b2t']).reshape(
        B, trunk_inputs.shape[1], -1, 2)
    return jnp.einsum('fpz,fdpz->fdz', bo, to)


if __name__ == "__main__":
    # small shapes: batch=2, branch field sampled as (4, 16) -> M=64,
    # D=8 trunk query points with 2 coords, hidden=32, P=16 basis functions.
    B, C, S = 2, 4, 16
    D, Cc = 8, 2
    M, H, P = C * S, 32, 16

    key = jax.random.PRNGKey(0)
    ks = jax.random.split(key, 10)
    params = {
        'w1b': jax.random.normal(ks[0], (M, H), jnp.float32) * 0.1,
        'b1b': jax.random.normal(ks[1], (H,), jnp.float32) * 0.1,
        'w2b': jax.random.normal(ks[2], (H, 2 * P), jnp.float32) * 0.1,
        'b2b': jax.random.normal(ks[3], (2 * P,), jnp.float32) * 0.1,
        'w1t': jax.random.normal(ks[4], (Cc, H), jnp.float32) * 0.1,
        'b1t': jax.random.normal(ks[5], (H,), jnp.float32) * 0.1,
        'w2t': jax.random.normal(ks[6], (H, 2 * P), jnp.float32) * 0.1,
        'b2t': jax.random.normal(ks[7], (2 * P,), jnp.float32) * 0.1,
    }

    branch_inputs = jax.random.normal(ks[8], (B, C, S), jnp.float32)
    trunk_inputs = jax.random.normal(ks[9], (B, D, Cc), jnp.float32)

    packed = prepare_params(params)           # one-time, outside the hot path
    # (use prepare_params(params, jnp.bfloat16) for the bf16 MXU-native path)

    out = deeponet_forward(branch_inputs, trunk_inputs, packed)
    out = jax.block_until_ready(out)

    ref = deeponet_reference(branch_inputs, trunk_inputs, params)
    assert out.shape == (B, D, 2), out.shape
    assert jnp.allclose(out, ref, atol=1e-4, rtol=1e-4), "mismatch vs reference"

    print("KERNEL_OK")
</pallas_src>

<mosaic_0001>
module attributes {stable_mosaic.version = 11 : i64} {
  func.func @deeponet_kernel(%arg0: i32, %arg1: i32, %arg2: memref<2x64xf32, #tpu.memory_space<vmem>>, %arg3: memref<2x8x2xf32, #tpu.memory_space<vmem>>, %arg4: memref<64x32xf32, #tpu.memory_space<vmem>>, %arg5: memref<1x32xf32, #tpu.memory_space<vmem>>, %arg6: memref<32x256xf32, #tpu.memory_space<vmem>>, %arg7: memref<1x256xf32, #tpu.memory_space<vmem>>, %arg8: memref<2x32xf32, #tpu.memory_space<vmem>>, %arg9: memref<1x32xf32, #tpu.memory_space<vmem>>, %arg10: memref<32x256xf32, #tpu.memory_space<vmem>>, %arg11: memref<1x256xf32, #tpu.memory_space<vmem>>, %arg12: memref<2x8x2xf32, #tpu.memory_space<vmem>>, %arg13: memref<2x256xf32, #tpu.memory_space<vmem>>) attributes {dimension_semantics = [#tpu.dimension_semantics<parallel>, #tpu.dimension_semantics<arbitrary>], iteration_bounds = array<i64: 1, 1>, scalar_prefetch = 0 : i64, scratch_operands = 1 : i64, tpu.core_type = #tpu.core_type<tc>, window_params = [{transform_indices = @transform_0, window_bounds = array<i64: 2, 64>}, {transform_indices = @transform_1, window_bounds = array<i64: 2, 8, 2>}, {pipeline_mode = #tpu.pipeline_mode<synchronous>, transform_indices = @transform_2, window_bounds = array<i64: 64, 32>}, {pipeline_mode = #tpu.pipeline_mode<synchronous>, transform_indices = @transform_3, window_bounds = array<i64: 1, 32>}, {pipeline_mode = #tpu.pipeline_mode<synchronous>, transform_indices = @transform_4, window_bounds = array<i64: 32, 256>}, {pipeline_mode = #tpu.pipeline_mode<synchronous>, transform_indices = @transform_5, window_bounds = array<i64: 1, 256>}, {pipeline_mode = #tpu.pipeline_mode<synchronous>, transform_indices = @transform_6, window_bounds = array<i64: 2, 32>}, {pipeline_mode = #tpu.pipeline_mode<synchronous>, transform_indices = @transform_7, window_bounds = array<i64: 1, 32>}, {pipeline_mode = #tpu.pipeline_mode<synchronous>, transform_indices = @transform_8, window_bounds = array<i64: 32, 256>}, {pipeline_mode = #tpu.pipeline_mode<synchronous>, transform_indices = @transform_9, window_bounds = array<i64: 1, 256>}, {transform_indices = @transform_10, window_bounds = array<i64: 2, 8, 2>}]} {
    %c0_i32 = arith.constant 0 : i32
    %0 = arith.cmpi eq, %arg1, %c0_i32 : i32
    %1 = arith.extui %0 : i1 to i32
    %c0_i32_0 = arith.constant 0 : i32
    %2 = arith.cmpi ne, %1, %c0_i32_0 : i32
    scf.if %2 {
      %c0_29 = arith.constant 0 : index
      %c0_30 = arith.constant 0 : index
      %68 = vector.load %arg2[%c0_29, %c0_30] : memref<2x64xf32, #tpu.memory_space<vmem>>, vector<2x64xf32>
      %c0_31 = arith.constant 0 : index
      %c0_32 = arith.constant 0 : index
      %69 = vector.load %arg4[%c0_31, %c0_32] : memref<64x32xf32, #tpu.memory_space<vmem>>, vector<64x32xf32>
      %cst_33 = arith.constant dense<0.000000e+00> : vector<2x32xf32>
      %70 = tpu.matmul %68, %69, %cst_33 {dimension_numbers = #tpu.dot_dimension_numbers<[1], [0], [0], [1], [0, 0, 1, 1], [], []>} : vector<2x64xf32>, vector<64x32xf32>, vector<2x32xf32> -> vector<2x32xf32>
      %c0_34 = arith.constant 0 : index
      %c0_35 = arith.constant 0 : index
      %71 = vector.load %arg5[%c0_34, %c0_35] : memref<1x32xf32, #tpu.memory_space<vmem>>, vector<1x32xf32>
      %72 = vector.broadcast %71 : vector<1x32xf32> to vector<2x32xf32>
      %73 = arith.addf %70, %72 : vector<2x32xf32>
      %cst_36 = arith.constant 0.000000e+00 : f32
      %74 = vector.broadcast %cst_36 : f32 to vector<2x32xf32>
      %75 = arith.maximumf %73, %74 : vector<2x32xf32>
      %c0_37 = arith.constant 0 : index
      %c0_38 = arith.constant 0 : index
      %76 = vector.load %arg6[%c0_37, %c0_38] : memref<32x256xf32, #tpu.memory_space<vmem>>, vector<32x256xf32>
      %cst_39 = arith.constant dense<0.000000e+00> : vector<2x256xf32>
      %77 = tpu.matmul %75, %76, %cst_39 {dimension_numbers = #tpu.dot_dimension_numbers<[1], [0], [0], [1], [0, 0, 1, 1], [], []>} : vector<2x32xf32>, vector<32x256xf32>, vector<2x256xf32> -> vector<2x256xf32>
      %c0_40 = arith.constant 0 : index
      %c0_41 = arith.constant 0 : index
      %78 = vector.load %arg7[%c0_40, %c0_41] : memref<1x256xf32, #tpu.memory_space<vmem>>, vector<1x256xf32>
      %79 = vector.broadcast %78 : vector<1x256xf32> to vector<2x256xf32>
      %80 = arith.addf %77, %79 : vector<2x256xf32>
      %c0_42 = arith.constant 0 : index
      %c0_43 = arith.constant 0 : index
      %81 = vector.load %arg13[%c0_42, %c0_43] : memref<2x256xf32, #tpu.memory_space<vmem>>, vector<2x256xf32>
      tpu.vector_store %arg13[%c0_42, %c0_43], %80 {strides = array<i32>} : memref<2x256xf32, #tpu.memory_space<vmem>>, vector<2x256xf32>,
    } else {
    }
    %c0 = arith.constant 0 : index
    %c0_1 = arith.constant 0 : index
    %c0_2 = arith.constant 0 : index
    %3 = vector.load %arg3[%c0, %c0_1, %c0_2] : memref<2x8x2xf32, #tpu.memory_space<vmem>>, vector<2x8x2xf32>
    %c0_3 = arith.constant 0 : index
    %c0_4 = arith.constant 0 : index
    %4 = vector.load %arg8[%c0_3, %c0_4] : memref<2x32xf32, #tpu.memory_space<vmem>>, vector<2x32xf32>
    %5 = vector.extract_strided_slice %3 {offsets = [0, 0, 0], sizes = [2, 8, 1], strides = [1, 1, 1]} : vector<2x8x2xf32> to vector<2x8x1xf32>
    %6 = vector.extract_strided_slice %4 {offsets = [0, 0], sizes = [1, 32], strides = [1, 1]} : vector<2x32xf32> to vector<1x32xf32>
    %7 = vector.shape_cast %6 : vector<1x32xf32> to vector<1x1x32xf32>
    %8 = vector.broadcast %5 : vector<2x8x1xf32> to vector<2x8x32xf32>
    %9 = vector.broadcast %7 : vector<1x1x32xf32> to vector<2x8x32xf32>
    %10 = arith.mulf %8, %9 : vector<2x8x32xf32>
    %c0_5 = arith.constant 0 : index
    %c0_6 = arith.constant 0 : index
    %11 = vector.load %arg9[%c0_5, %c0_6] : memref<1x32xf32, #tpu.memory_space<vmem>>, vector<1x32xf32>
    %12 = vector.shape_cast %11 : vector<1x32xf32> to vector<1x1x32xf32>
    %13 = vector.broadcast %12 : vector<1x1x32xf32> to vector<2x8x32xf32>
    %14 = arith.addf %10, %13 : vector<2x8x32xf32>
    %15 = vector.extract_strided_slice %3 {offsets = [0, 0, 1], sizes = [2, 8, 1], strides = [1, 1, 1]} : vector<2x8x2xf32> to vector<2x8x1xf32>
    %16 = vector.extract_strided_slice %4 {offsets = [1, 0], sizes = [1, 32], strides = [1, 1]} : vector<2x32xf32> to vector<1x32xf32>
    %17 = vector.shape_cast %16 : vector<1x32xf32> to vector<1x1x32xf32>
    %18 = vector.broadcast %15 : vector<2x8x1xf32> to vector<2x8x32xf32>
    %19 = vector.broadcast %17 : vector<1x1x32xf32> to vector<2x8x32xf32>
    %20 = arith.mulf %18, %19 : vector<2x8x32xf32>
    %21 = arith.addf %14, %20 : vector<2x8x32xf32>
    %cst = arith.constant 0.000000e+00 : f32
    %22 = vector.broadcast %cst : f32 to vector<2x8x32xf32>
    %23 = arith.maximumf %21, %22 : vector<2x8x32xf32>
    %c0_7 = arith.constant 0 : index
    %c0_8 = arith.constant 0 : index
    %24 = vector.load %arg10[%c0_7, %c0_8] : memref<32x256xf32, #tpu.memory_space<vmem>>, vector<32x256xf32>
    %c0_9 = arith.constant 0 : index
    %c0_10 = arith.constant 0 : index
    %25 = vector.load %arg11[%c0_9, %c0_10] : memref<1x256xf32, #tpu.memory_space<vmem>>, vector<1x256xf32>
    %26 = vector.extract_strided_slice %23 {offsets = [0, 0, 0], sizes = [1, 8, 32], strides = [1, 1, 1]} : vector<2x8x32xf32> to vector<1x8x32xf32>
    %27 = vector.shape_cast %26 : vector<1x8x32xf32> to vector<8x32xf32>
    %cst_11 = arith.constant dense<0.000000e+00> : vector<8x256xf32>
    %28 = tpu.matmul %27, %24, %cst_11 {dimension_numbers = #tpu.dot_dimension_numbers<[1], [0], [0], [1], [0, 0, 1, 1], [], []>} : vector<8x32xf32>, vector<32x256xf32>, vector<8x256xf32> -> vector<8x256xf32>
    %29 = vector.broadcast %25 : vector<1x256xf32> to vector<8x256xf32>
    %30 = arith.addf %28, %29 : vector<8x256xf32>
    %c0_12 = arith.constant 0 : index
    %c0_13 = arith.constant 0 : index
    %31 = vector.load %arg13[%c0_12, %c0_13] : memref<2x256xf32, #tpu.memory_space<vmem>>, vector<1x128xf32>
    %c0_14 = arith.constant 0 : index
    %c128 = arith.constant 128 : index
    %32 = vector.load %arg13[%c0_14, %c128] : memref<2x256xf32, #tpu.memory_space<vmem>>, vector<1x128xf32>
    %33 = vector.extract_strided_slice %30 {offsets = [0, 0], sizes = [8, 128], strides = [1, 1]} : vector<8x256xf32> to vector<8x128xf32>
    %34 = vector.broadcast %31 : vector<1x128xf32> to vector<8x128xf32>
    %35 = arith.mulf %33, %34 : vector<8x128xf32>
    %cst_15 = arith.constant dense<0.000000e+00> : vector<8xf32>
    %36 = vector.multi_reduction <add>, %35, %cst_15 [1] : vector<8x128xf32> to vector<8xf32>
    %37 = vector.shape_cast %36 : vector<8xf32> to vector<8x1xf32>
    %38 = vector.extract_strided_slice %30 {offsets = [0, 128], sizes = [8, 128], strides = [1, 1]} : vector<8x256xf32> to vector<8x128xf32>
    %39 = vector.broadcast %32 : vector<1x128xf32> to vector<8x128xf32>
    %40 = arith.mulf %38, %39 : vector<8x128xf32>
    %cst_16 = arith.constant dense<0.000000e+00> : vector<8xf32>
    %41 = vector.multi_reduction <add>, %40, %cst_16 [1] : vector<8x128xf32> to vector<8xf32>
    %42 = vector.shape_cast %41 : vector<8xf32> to vector<8x1xf32>
    %43 = tpu.concatenate %37, %42 in 1 : vector<8x1xf32>, vector<8x1xf32> -> vector<8x2xf32>
    %c0_17 = arith.constant 0 : index
    %c0_18 = arith.constant 0 : index
    %c0_19 = arith.constant 0 : index
    %44 = vector.load %arg12[%c0_17, %c0_18, %c0_19] : memref<2x8x2xf32, #tpu.memory_space<vmem>>, vector<1x8x2xf32>
    %45 = vector.shape_cast %44 : vector<1x8x2xf32> to vector<8x2xf32>
    %46 = vector.shape_cast %43 : vector<8x2xf32> to vector<1x8x2xf32>
    tpu.vector_store %arg12[%c0_17, %c0_18, %c0_19], %46 {strides = array<i32>} : memref<2x8x2xf32, #tpu.memory_space<vmem>>, vector<1x8x2xf32>,
    %47 = vector.extract_strided_slice %23 {offsets = [1, 0, 0], sizes = [1, 8, 32], strides = [1, 1, 1]} : vector<2x8x32xf32> to vector<1x8x32xf32>
    %48 = vector.shape_cast %47 : vector<1x8x32xf32> to vector<8x32xf32>
    %cst_20 = arith.constant dense<0.000000e+00> : vector<8x256xf32>
    %49 = tpu.matmul %48, %24, %cst_20 {dimension_numbers = #tpu.dot_dimension_numbers<[1], [0], [0], [1], [0, 0, 1, 1], [], []>} : vector<8x32xf32>, vector<32x256xf32>, vector<8x256xf32> -> vector<8x256xf32>
    %50 = vector.broadcast %25 : vector<1x256xf32> to vector<8x256xf32>
    %51 = arith.addf %49, %50 : vector<8x256xf32>
    %c1 = arith.constant 1 : index
    %c0_21 = arith.constant 0 : index
    %52 = vector.load %arg13[%c1, %c0_21] : memref<2x256xf32, #tpu.memory_space<vmem>>, vector<1x128xf32>
    %c1_22 = arith.constant 1 : index
    %c128_23 = arith.constant 128 : index
    %53 = vector.load %arg13[%c1_22, %c128_23] : memref<2x256xf32, #tpu.memory_space<vmem>>, vector<1x128xf32>
    %54 = vector.extract_strided_slice %51 {offsets = [0, 0], sizes = [8, 128], strides = [1, 1]} : vector<8x256xf32> to vector<8x128xf32>
    %55 = vector.broadcast %52 : vector<1x128xf32> to vector<8x128xf32>
    %56 = arith.mulf %54, %55 : vector<8x128xf32>
    %cst_24 = arith.constant dense<0.000000e+00> : vector<8xf32>
    %57 = vector.multi_reduction <add>, %56, %cst_24 [1] : vector<8x128xf32> to vector<8xf32>
    %58 = vector.shape_cast %57 : vector<8xf32> to vector<8x1xf32>
    %59 = vector.extract_strided_slice %51 {offsets = [0, 128], sizes = [8, 128], strides = [1, 1]} : vector<8x256xf32> to vector<8x128xf32>
    %60 = vector.broadcast %53 : vector<1x128xf32> to vector<8x128xf32>
    %61 = arith.mulf %59, %60 : vector<8x128xf32>
    %cst_25 = arith.constant dense<0.000000e+00> : vector<8xf32>
    %62 = vector.multi_reduction <add>, %61, %cst_25 [1] : vector<8x128xf32> to vector<8xf32>
    %63 = vector.shape_cast %62 : vector<8xf32> to vector<8x1xf32>
    %64 = tpu.concatenate %58, %63 in 1 : vector<8x1xf32>, vector<8x1xf32> -> vector<8x2xf32>
    %c1_26 = arith.constant 1 : index
    %c0_27 = arith.constant 0 : index
    %c0_28 = arith.constant 0 : index
    %65 = vector.load %arg12[%c1_26, %c0_27, %c0_28] : memref<2x8x2xf32, #tpu.memory_space<vmem>>, vector<1x8x2xf32>
    %66 = vector.shape_cast %65 : vector<1x8x2xf32> to vector<8x2xf32>
    %67 = vector.shape_cast %64 : vector<8x2xf32> to vector<1x8x2xf32>
    tpu.vector_store %arg12[%c1_26, %c0_27, %c0_28], %67 {strides = array<i32>} : memref<2x8x2xf32, #tpu.memory_space<vmem>>, vector<1x8x2xf32>,
    return
  }
  func.func @transform_0(%arg0: i32, %arg1: i32) -> (i32, i32) {
    %c0_i32 = arith.constant 0 : i32
    %c0_i32_0 = arith.constant 0 : i32
    return %arg0, %c0_i32 : i32, i32
  }
  func.func @transform_1(%arg0: i32, %arg1: i32) -> (i32, i32, i32) {
    %c0_i32 = arith.constant 0 : i32
    %c0_i32_0 = arith.constant 0 : i32
    return %arg0, %arg1, %c0_i32 : i32, i32, i32
  }
  func.func @transform_2(%arg0: i32, %arg1: i32) -> (i32, i32) {
    %c0_i32 = arith.constant 0 : i32
    %c0_i32_0 = arith.constant 0 : i32
    %c0_i32_1 = arith.constant 0 : i32
    return %c0_i32, %c0_i32_0 : i32, i32
  }
  func.func @transform_3(%arg0: i32, %arg1: i32) -> (i32, i32) {
    %c0_i32 = arith.constant 0 : i32
    %c0_i32_0 = arith.constant 0 : i32
    %c0_i32_1 = arith.constant 0 : i32
    return %c0_i32, %c0_i32_0 : i32, i32
  }
  func.func @transform_4(%arg0: i32, %arg1: i32) -> (i32, i32) {
    %c0_i32 = arith.constant 0 : i32
    %c0_i32_0 = arith.constant 0 : i32
    %c0_i32_1 = arith.constant 0 : i32
    return %c0_i32, %c0_i32_0 : i32, i32
  }
  func.func @transform_5(%arg0: i32, %arg1: i32) -> (i32, i32) {
    %c0_i32 = arith.constant 0 : i32
    %c0_i32_0 = arith.constant 0 : i32
    %c0_i32_1 = arith.constant 0 : i32
    return %c0_i32, %c0_i32_0 : i32, i32
  }
  func.func @transform_6(%arg0: i32, %arg1: i32) -> (i32, i32) {
    %c0_i32 = arith.constant 0 : i32
    %c0_i32_0 = arith.constant 0 : i32
    %c0_i32_1 = arith.constant 0 : i32
    return %c0_i32, %c0_i32_0 : i32, i32
  }
  func.func @transform_7(%arg0: i32, %arg1: i32) -> (i32, i32) {
    %c0_i32 = arith.constant 0 : i32
    %c0_i32_0 = arith.constant 0 : i32
    %c0_i32_1 = arith.constant 0 : i32
    return %c0_i32, %c0_i32_0 : i32, i32
  }
  func.func @transform_8(%arg0: i32, %arg1: i32) -> (i32, i32) {
    %c0_i32 = arith.constant 0 : i32
    %c0_i32_0 = arith.constant 0 : i32
    %c0_i32_1 = arith.constant 0 : i32
    return %c0_i32, %c0_i32_0 : i32, i32
  }
  func.func @transform_9(%arg0: i32, %arg1: i32) -> (i32, i32) {
    %c0_i32 = arith.constant 0 : i32
    %c0_i32_0 = arith.constant 0 : i32
    %c0_i32_1 = arith.constant 0 : i32
    return %c0_i32, %c0_i32_0 : i32, i32
  }
  func.func @transform_10(%arg0: i32, %arg1: i32) -> (i32, i32, i32) {
    %c0_i32 = arith.constant 0 : i32
    %c0_i32_0 = arith.constant 0 : i32
    return %arg0, %arg1, %c0_i32 : i32, i32, i32
  }
}

</mosaic_0001>

<bundles_post_ra>
// kernel: deeponet_forward.1
= control target key start
LH: loop header
LB: loop body
LE: loop exit
PB: predicated region body
PF: predicated region fallthrough
CT: control target
= control target key end

     0   :  { %15 = vsyncpa [#allocation4], 0  ;;  %s1218_s0 = inlined_call_operand.hbm [shape: f32[2,64], index: 0, kind: input, shape index: {}]   ;;  %s1219_s1 = inlined_call_operand.hbm [shape: f32[2,8,2], index: 1, kind: input, shape index: {}]   ;;  %s1220_s2 = inlined_call_operand.hbm [shape: f32[64,32], index: 2, kind: input, shape index: {}]   ;;  %s1221_s3 = inlined_call_operand.hbm [shape: f32[1,32], index: 3, kind: input, shape index: {}]   ;;  %s1222_s4 = inlined_call_operand.hbm [shape: f32[32,256], index: 4, kind: input, shape index: {}]   ;;  %s1223_s5 = inlined_call_operand.hbm [shape: f32[1,256], index: 5, kind: input, shape index: {}]   ;;  %s1224_s6 = inlined_call_operand.hbm [shape: f32[2,32], index: 6, kind: input, shape index: {}]   ;;  %s1225_s7 = inlined_call_operand.hbm [shape: f32[1,32], index: 7, kind: input, shape index: {}]   ;;  %s1226_s8 = inlined_call_operand.hbm [shape: f32[32,256], index: 8, kind: input, shape index: {}]   ;;  %s1227_s9 = inlined_call_operand.hbm [shape: f32[1,256], index: 9, kind: input, shape index: {}]   ;;  %s1228_s10 = inlined_call_operand.hbm [shape: f32[2,8,2], index: 10, kind: output, shape index: {}]  }
   0x1   :  { %16 = vsyncpa [#allocation7], 0 }
   0x2   :  { %17 = vsyncpa [#allocation10], 0 }
   0x3   :  { %18 = vsyncpa [#allocation13], 0 }
   0x4   :  { %19 = vsyncpa [#allocation16], 0 }
   0x5   :  { %20 = vsyncpa [#allocation19], 0 }
   0x6   :  { %21 = vsyncpa [#allocation5], 0  ;;  %s992_s13 = smov [#allocation6]   ;;  %s736_s17 = scalar_lea.hbm %s1219_s1, 256 }
   0x7   :  { %s37_s14 = sshll.u32 %s992_s13, 4  ;;  %p737_p0 = scmp.ne.s32.totalorder %s1219_s1, %s736_s17  ;;  %s38_s14 = int_to_ptr.vmem [resolvable:$true] %s37_s14 }
   0x8   :  { %p740_p1 = scmp.lt.u32.totalorder %s736_s17, %s1219_s1 }
   0xa   :  { %p742_p2 = pnand %p740_p1, %p737_p0 }
   0xc   :  { %745 = shalt.err (!%p742_p2)
}
   0xd   :  { %s746_s22 = scalar_lea.vmem %s38_s14, 256  ;;  %p751_p4 = scmp.lt.s32.totalorder %s38_s14, %s38_s14 }
   0xe   :  { %p747_p3 = scmp.ne.s32.totalorder %s38_s14, %s746_s22  ;;  %p752_p5 = scmp.lt.s32.totalorder %s746_s22, %s746_s22 }
  0x10   :  { %p753_p6 = por %p752_p5, %p751_p4 }
  0x12   :  { %p754_p7 = pnand %p753_p6, %p747_p3 }
  0x14   :  { %757 = shalt.err (!%p754_p7)
}
  0x15   :  { %s993_s23 = smov 128   ;;  %s994_s24 = smov 8  }
  0x16   :  { %43 = dma.hbm_to_vmem [thread:$0]  %s1219_s1, 256, %s38_s14, [#allocation7], %s993_s23, %s993_s23, %s994_s24  }
  0x17   :  { %s995_s27 = smov [#allocation9]   ;;  %s996_s29 = smov [#allocation12]  }
  0x18   :  { %s62_s28 = sshll.u32 %s995_s27, 4  ;;  %s84_s30 = sshll.u32 %s996_s29, 4  ;;  %s63_s28 = int_to_ptr.vmem [resolvable:$true] %s62_s28  ;;  %s85_s30 = int_to_ptr.vmem [resolvable:$true] %s84_s30 }
  0x19   :  { %s758_s13 = scalar_lea.hbm %s1221_s3, 16 }
  0x1a   :  { %p759_p8 = scmp.ne.s32.totalorder %s1221_s3, %s758_s13  ;;  %p762_p9 = scmp.lt.u32.totalorder %s758_s13, %s1221_s3 }
  0x1c   :  { %p764_p10 = pnand %p762_p9, %p759_p8 }
  0x1e   :  { %767 = shalt.err (!%p764_p10)
}
  0x1f   :  { %s768_s1 = scalar_lea.vmem %s63_s28, 16  ;;  %s772_s14 = scalar_lea.vmem %s63_s28, 32 }
  0x20   :  { %p769_p11 = scmp.ne.s32.totalorder %s63_s28, %s768_s1  ;;  %p773_p12 = scmp.lt.s32.totalorder %s63_s28, %s63_s28 }
  0x21   :  { %p774_p13 = scmp.lt.s32.totalorder %s772_s14, %s768_s1 }
  0x23   :  { %p775_p0 = por %p774_p13, %p773_p12 }
  0x25   :  { %p776_p1 = pnand %p775_p0, %p769_p11 }
  0x27   :  { %779 = shalt.err (!%p776_p1)
}
  0x28   :  { %65 = dma.hbm_to_vmem [thread:$0]  %s1221_s3, 16, %s63_s28, [#allocation10]  }
  0x29   :  { %s780_s25 = scalar_lea.hbm %s1223_s5, 32 }
  0x2a   :  { %p781_p2 = scmp.ne.s32.totalorder %s1223_s5, %s780_s25  ;;  %p784_p3 = scmp.lt.u32.totalorder %s780_s25, %s1223_s5 }
  0x2c   :  { %p786_p4 = pnand %p784_p3, %p781_p2 }
  0x2e   :  { %789 = shalt.err (!%p786_p4)
}
  0x2f   :  { %s790_s12 = scalar_lea.vmem %s85_s30, 32  ;;  %p795_p6 = scmp.lt.s32.totalorder %s85_s30, %s85_s30 }
  0x30   :  { %p791_p5 = scmp.ne.s32.totalorder %s85_s30, %s790_s12  ;;  %p796_p7 = scmp.lt.s32.totalorder %s790_s12, %s790_s12 }
  0x32   :  { %p797_p8 = por %p796_p7, %p795_p6 }
  0x34   :  { %p798_p9 = pnand %p797_p8, %p791_p5 }
  0x36   :  { %801 = shalt.err (!%p798_p9)
}
  0x37   :  { %87 = dma.hbm_to_vmem [thread:$0]  %s1223_s5, 32, %s85_s30, [#allocation13]  }
  0x38   :  { %s997_s13 = smov [#allocation15]   ;;  %s998_s16 = smov [#allocation3]  }
  0x39   :  { %s104_s15 = sshll.u32 %s997_s13, 4  ;;  %s28_s17 = sshll.u32 %s998_s16, 4  ;;  %s105_s15 = int_to_ptr.vmem [resolvable:$true] %s104_s15  ;;  %s29_s17 = int_to_ptr.vmem [resolvable:$true] %s28_s17 }
  0x3a   :  { %s802_s14 = scalar_lea.hbm %s1225_s7, 16 }
  0x3b   :  { %p803_p10 = scmp.ne.s32.totalorder %s1225_s7, %s802_s14  ;;  %p806_p11 = scmp.lt.u32.totalorder %s802_s14, %s1225_s7 }
  0x3d   :  { %p808_p12 = pnand %p806_p11, %p803_p10 }
  0x3f   :  { %811 = shalt.err (!%p808_p12)
}
  0x40   :  { %s812_s5 = scalar_lea.vmem %s105_s15, 16  ;;  %s816_s30 = scalar_lea.vmem %s105_s15, 32 }
  0x41   :  { %p813_p13 = scmp.ne.s32.totalorder %s105_s15, %s812_s5  ;;  %p817_p0 = scmp.lt.s32.totalorder %s105_s15, %s105_s15 }
  0x42   :  { %p818_p1 = scmp.lt.s32.totalorder %s816_s30, %s812_s5 }
  0x44   :  { %p819_p2 = por %p818_p1, %p817_p0 }
  0x46   :  { %p820_p3 = pnand %p819_p2, %p813_p13 }
  0x48   :  { %823 = shalt.err (!%p820_p3)
}
  0x49   :  { %107 = dma.hbm_to_vmem [thread:$0]  %s1225_s7, 16, %s105_s15, [#allocation16]  }
  0x4a   :  { %s824_s11 = scalar_lea.hbm %s1218_s0, 32 }
  0x4b   :  { %p825_p4 = scmp.ne.s32.totalorder %s1218_s0, %s824_s11  ;;  %p828_p5 = scmp.lt.u32.totalorder %s824_s11, %s1218_s0 }
  0x4d   :  { %p830_p6 = pnand %p828_p5, %p825_p4 }
  0x4f   :  { %833 = shalt.err (!%p830_p6)
}
  0x50   :  { %s834_s16 = scalar_lea.vmem %s29_s17, 32  ;;  %p839_p8 = scmp.lt.s32.totalorder %s29_s17, %s29_s17 }
  0x51   :  { %p835_p7 = scmp.ne.s32.totalorder %s29_s17, %s834_s16  ;;  %p840_p9 = scmp.lt.s32.totalorder %s834_s16, %s834_s16 }
  0x53   :  { %p841_p10 = por %p840_p9, %p839_p8 }
  0x55   :  { %p842_p11 = pnand %p841_p10, %p835_p7 }
  0x57   :  { %845 = shalt.err (!%p842_p11)
}
  0x58   :  { %31 = dma.hbm_to_vmem [thread:$0]  %s1218_s0, 32, %s29_s17, [#allocation4]  }
  0x59   :  { %s999_s18 = smov [#allocation8]   ;;  %s1000_s14 = smov [#allocation11]  }
  0x5a   :  { %s49_s1 = sshll.u32 %s999_s18, 4  ;;  %s71_s19 = sshll.u32 %s1000_s14, 4  ;;  %s50_s1 = int_to_ptr.vmem [resolvable:$true] %s49_s1  ;;  %s72_s19 = int_to_ptr.vmem [resolvable:$true] %s71_s19 }
  0x5b   :  { %s846_s22 = scalar_lea.hbm %s1220_s2, 1024 }
  0x5c   :  { %p847_p12 = scmp.ne.s32.totalorder %s1220_s2, %s846_s22  ;;  %p850_p13 = scmp.lt.u32.totalorder %s846_s22, %s1220_s2 }
  0x5e   :  { %p852_p0 = pnand %p850_p13, %p847_p12 }
  0x60   :  { %855 = shalt.err (!%p852_p0)
}
  0x61   :  { %s856_s0 = scalar_lea.vmem %s50_s1, 1024  ;;  %p861_p2 = scmp.lt.s32.totalorder %s50_s1, %s50_s1 }
  0x62   :  { %p857_p1 = scmp.ne.s32.totalorder %s50_s1, %s856_s0  ;;  %p862_p3 = scmp.lt.s32.totalorder %s856_s0, %s856_s0 }
  0x64   :  { %p863_p4 = por %p862_p3, %p861_p2 }
  0x66   :  { %p864_p5 = pnand %p863_p4, %p857_p1 }
  0x68   :  { %867 = shalt.err (!%p864_p5)
}
  0x69   :  { %55 = dma.hbm_to_vmem [thread:$0]  %s1220_s2, 1024, %s50_s1, [#allocation7], %s993_s23, %s993_s23, %s994_s24  }
  0x6a   :  { %s868_s12 = scalar_lea.hbm %s1222_s4, 1024 }
  0x6b   :  { %p869_p6 = scmp.ne.s32.totalorder %s1222_s4, %s868_s12  ;;  %p872_p7 = scmp.lt.u32.totalorder %s868_s12, %s1222_s4 }
  0x6d   :  { %p874_p8 = pnand %p872_p7, %p869_p6 }
  0x6f   :  { %877 = shalt.err (!%p874_p8)
}
  0x70   :  { %s878_s7 = scalar_lea.vmem %s72_s19, 1024  ;;  %p883_p10 = scmp.lt.s32.totalorder %s72_s19, %s72_s19 }
  0x71   :  { %p879_p9 = scmp.ne.s32.totalorder %s72_s19, %s878_s7  ;;  %p884_p11 = scmp.lt.s32.totalorder %s878_s7, %s878_s7 }
  0x73   :  { %p885_p12 = por %p884_p11, %p883_p10 }
  0x75   :  { %p886_p13 = pnand %p885_p12, %p879_p9 }
  0x77   :  { %889 = shalt.err (!%p886_p13)
}
  0x78   :  { %s1001_s2 = smov 256   ;;  %s1002_s15 = smov 16  }
  0x79   :  { %77 = dma.hbm_to_vmem [thread:$0]  %s1222_s4, 1024, %s72_s19, [#allocation10], %s1001_s2, %s1001_s2, %s1002_s15  }
  0x7a   :  { %s1003_s14 = smov [#allocation14]   ;;  %s1004_s21 = smov [#allocation17]  }
  0x7b   :  { %s94_s20 = sshll.u32 %s1003_s14, 4  ;;  %s113_s22 = sshll.u32 %s1004_s21, 4  ;;  %s95_s20 = int_to_ptr.vmem [resolvable:$true] %s94_s20  ;;  %s114_s22 = int_to_ptr.vmem [resolvable:$true] %s113_s22 }
  0x7c   :  { %s890_s25 = scalar_lea.hbm %s1224_s6, 32 }
  0x7d   :  { %p891_p0 = scmp.ne.s32.totalorder %s1224_s6, %s890_s25  ;;  %p894_p1 = scmp.lt.u32.totalorder %s890_s25, %s1224_s6 }
  0x7f   :  { %p896_p2 = pnand %p894_p1, %p891_p0 }
  0x81   :  { %899 = shalt.err (!%p896_p2)
}
  0x82   :  { %s900_s4 = scalar_lea.vmem %s95_s20, 32  ;;  %p905_p4 = scmp.lt.s32.totalorder %s95_s20, %s95_s20 }
  0x83   :  { %p901_p3 = scmp.ne.s32.totalorder %s95_s20, %s900_s4  ;;  %p906_p5 = scmp.lt.s32.totalorder %s900_s4, %s900_s4 }
  0x85   :  { %p907_p6 = por %p906_p5, %p905_p4 }
  0x87   :  { %p908_p7 = pnand %p907_p6, %p901_p3 }
  0x89   :  { %911 = shalt.err (!%p908_p7)
}
  0x8a   :  { %97 = dma.hbm_to_vmem [thread:$0]  %s1224_s6, 32, %s95_s20, [#allocation13]  }
  0x8b   :  { %s912_s3 = scalar_lea.hbm %s1226_s8, 1024 }
  0x8c   :  { %p913_p8 = scmp.ne.s32.totalorder %s1226_s8, %s912_s3  ;;  %p916_p9 = scmp.lt.u32.totalorder %s912_s3, %s1226_s8 }
  0x8e   :  { %p918_p10 = pnand %p916_p9, %p913_p8 }
  0x90   :  { %921 = shalt.err (!%p918_p10)
}
  0x91   :  { %s922_s18 = scalar_lea.vmem %s114_s22, 1024  ;;  %p927_p12 = scmp.lt.s32.totalorder %s114_s22, %s114_s22 }
  0x92   :  { %p923_p11 = scmp.ne.s32.totalorder %s114_s22, %s922_s18  ;;  %p928_p13 = scmp.lt.s32.totalorder %s922_s18, %s922_s18 }
  0x94   :  { %p929_p0 = por %p928_p13, %p927_p12 }
  0x96   :  { %p930_p1 = pnand %p929_p0, %p923_p11 }
  0x98   :  { %933 = shalt.err (!%p930_p1)
}
  0x99   :  { %119 = dma.hbm_to_vmem [thread:$0]  %s1226_s8, 1024, %s114_s22, [#allocation16], %s1001_s2, %s1001_s2, %s1002_s15  }
  0x9a   :  { %s1005_s14 = smov [#allocation18]   ;;  %s934_s30 = scalar_lea.hbm %s1227_s9, 32 }
  0x9b   :  { %s126_s20 = sshll.u32 %s1005_s14, 4  ;;  %p935_p2 = scmp.ne.s32.totalorder %s1227_s9, %s934_s30  ;;  %s127_s20 = int_to_ptr.vmem [resolvable:$true] %s126_s20 }
  0x9c   :  { %p938_p3 = scmp.lt.u32.totalorder %s934_s30, %s1227_s9 }
  0x9e   :  { %p940_p4 = pnand %p938_p3, %p935_p2 }
  0xa0   :  { %943 = shalt.err (!%p940_p4)
}
  0xa1   :  { %s944_s27 = scalar_lea.vmem %s127_s20, 32  ;;  %p949_p6 = scmp.lt.s32.totalorder %s127_s20, %s127_s20 }
  0xa2   :  { %p945_p5 = scmp.ne.s32.totalorder %s127_s20, %s944_s27  ;;  %p950_p7 = scmp.lt.s32.totalorder %s944_s27, %s944_s27 }
  0xa4   :  { %p951_p8 = por %p950_p7, %p949_p6 }
  0xa6   :  { %p952_p9 = pnand %p951_p8, %p945_p5 }
  0xa8   :  { %955 = shalt.err (!%p952_p9)
}
  0xa9   :  { %129 = dma.hbm_to_vmem [thread:$0]  %s1227_s9, 32, %s127_s20, [#allocation19]  }
  0xaa   :  { %978 = dma.done.wait [#allocation4], 32  }
  0xab   :  { %979 = vsyncadd [#allocation4], 4294967264 }
  0xac   :  { %980 = dma.done.wait [#allocation7], 1280  }
  0xad   :  { %981 = vsyncadd [#allocation7], 4294966016 }
  0xae   :  { %982 = dma.done.wait [#allocation10], 1040  }
  0xaf   :  { %983 = vsyncadd [#allocation10], 4294966256 }
  0xb0   :  { %984 = dma.done.wait [#allocation13], 64  }
  0xb1   :  { %985 = vsyncadd [#allocation13], 4294967232 }
  0xb2   :  { %986 = dma.done.wait [#allocation16], 1040  }
  0xb3   :  { %987 = vsyncadd [#allocation16], 4294966256 }
  0xb4   :  { %988 = dma.done.wait [#allocation19], 32  }
  0xb5   :  { %989 = vsyncadd [#allocation19], 4294967264  ;;  %v1006_v0 = vmov 0.0|0.0   ;;  %vm1007_vm0 = vmmov 0   ;;  %v1008_v1 = vmov 0.0   ;;  %v1009_v2 = vmov 0  }
  0xb6   :  { %677 = vmatprep.subr.bf16.mxu0 %v1006_v0  ;;  %674 = vmatprep.mubr.msk.f32.mxu0 %vm1007_vm0, %v1008_v1  ;;  %v1010_v3 = vmov 1   ;;  %v165_v4 = vld [vmem:[#allocation8] sm:$0xff]  ;;  %v166_v5 = vld [vmem:[#allocation8 + $0x8] sm:$0xff]  ;;  %v167_v6 = vld [vmem:[#allocation8 + $0x10] sm:$0xff]  ;;  %vm180_vm1 = vcmask 523264   ;;  %v265_v43 = vlaneseq  ;;  %vm275_vm2 = vcmask 261120  }
  0xb7   :  { %733 = vset.pattern.permute.xlu0 %v1009_v2  ;;  %734 = vset.pattern.permute.xlu1 %v1010_v3  ;;  %v678_v7 = vpack.c.bf16 %v166_v5, %v165_v4  ;;  %v168_v8 = vld [vmem:[#allocation8 + $0x18] sm:$0xff]  ;;  %v169_v9 = vld [vmem:[#allocation8 + $0x20] sm:$0xff]  ;;  %v170_v11 = vld [vmem:[#allocation8 + $0x28] sm:$0xff]  ;;  %vm519_vm3 = vcmask 7168   ;;  %vm521_vm4 = vcmask 15360   ;;  %s1011_s9 = smov [#allocation20]  }
  0xb8   :  { %343 = vmatprep.mubr.f32.mxu1 %v1008_v1  ;;  %v681_v10 = vpack.c.bf16 %v168_v8, %v167_v6  ;;  %v362_v12 = vld [vmem:[#allocation6] sm:$0xff]  ;;  %v258_v14 = vld [vmem:[#allocation11 + $0x18] sm:$0xff]  ;;  %v255_v15 = vld [vmem:[#allocation11] sm:$0xff]  ;;  %v684_v20 = vpack.c.bf16 %v170_v11, %v169_v9  ;;  %v266_v44 = vshrl.u32 %v265_v43, 7  ;;  %s621_s15 = sshll.u32 %s1011_s9, 4  ;;  %s622_s15 = int_to_ptr.vmem [resolvable:$true] %s621_s15 }
  0xb9   :  { %679 = vmatpush3.bf16.msra.mxu0 %v678_v7  ;;  %v256_v13 = vld [vmem:[#allocation11 + $0x8] sm:$0xff]  ;;  %367 = vperm.xlu0 %733, %v362_v12   ;;  %v257_v16 = vld [vmem:[#allocation11 + $0x10] sm:$0xff]  ;;  %v262_v26 = vld [vmem:[#allocation11 + $0x38] sm:$0xff]  ;;  %s956_s22 = scalar_lea.vmem %s622_s15, 256  ;;  %p961_p11 = scmp.lt.s32.totalorder %s622_s15, %s622_s15 }
  0xba   :  { %680 = vmatprep.subr.bf16.mxu0 %v1006_v0  ;;  %391 = vperm.xlu1 %734, %v362_v12   ;;  %v363_v17 = vld [vmem:[#allocation6 + $0x8] sm:$0xff]  ;;  %v689_v18 = vpack.c.bf16 %v258_v14, %v256_v13  ;;  %v691_v19 = vpack.c.bf16 %v257_v16, %v255_v15  ;;  %v171_v21 = vld [vmem:[#allocation8 + $0x30] sm:$0xff]  ;;  %v164_v24 = vld [vmem:[#allocation3] sm:$0x3]  ;;  %v267_v45 = vsub.s32 0, %v266_v44  ;;  %v271_v47 = vsub.s32 1, %v266_v44  ;;  %p957_p10 = scmp.ne.s32.totalorder %s622_s15, %s956_s22  ;;  %p962_p12 = scmp.lt.s32.totalorder %s956_s22, %s956_s22 }
  0xbb   :  { %v172_v22 = vld [vmem:[#allocation8 + $0x38] sm:$0xff]  ;;  %v260_v25 = vld [vmem:[#allocation11 + $0x28] sm:$0xff]  ;;  %v259_v28 = vld [vmem:[#allocation11 + $0x20] sm:$0xff] }
  0xbc   :  { %690 = vmatprep.subr.bf16.mxu1 %v689_v18  ;;  %v687_v23 = vpack.c.bf16 %v172_v22, %v171_v21  ;;  %v693_v27 = vpack.c.bf16 %v262_v26, %v260_v25  ;;  %v261_v29 = vld [vmem:[#allocation11 + $0x30] sm:$0xff]  ;;  %v411_v32 = vld [vmem:[#allocation17 + $0x18] sm:$0xff]  ;;  %v408_v34 = vld [vmem:[#allocation17] sm:$0xff]  ;;  %p963_p13 = por %p962_p12, %p961_p11 }
  0xbd   :  { %682 = vmatpush3.bf16.msra.mxu0 %v681_v10  ;;  %372 = vperm.xlu0 %733, %v363_v17   ;;  %v695_v30 = vpack.c.bf16 %v261_v29, %v259_v28  ;;  %v409_v31 = vld [vmem:[#allocation17 + $0x8] sm:$0xff]  ;;  %v410_v35 = vld [vmem:[#allocation17 + $0x10] sm:$0xff]  ;;  %v415_v38 = vld [vmem:[#allocation17 + $0x38] sm:$0xff] }
  0xbe   :  { %683 = vmatprep.subr.bf16.mxu0 %v1006_v0  ;;  %395 = vperm.xlu1 %734, %v363_v17   ;;  %v697_v33 = vpack.c.bf16 %v411_v32, %v409_v31  ;;  %v699_v36 = vpack.c.bf16 %v410_v35, %v408_v34  ;;  %v413_v37 = vld [vmem:[#allocation17 + $0x28] sm:$0xff]  ;;  %v412_v40 = vld [vmem:[#allocation17 + $0x20] sm:$0xff]  ;;  %v414_v41 = vld [vmem:[#allocation17 + $0x30] sm:$0xff]  ;;  %p964_p0 = pnand %p963_p13, %p957_p10 }
  0xbf   :  { %692 = vmatpush1.bf16.msra.mxu1 %v691_v19  ;;  %v701_v39 = vpack.c.bf16 %v415_v38, %v413_v37  ;;  %v703_v42 = vpack.c.bf16 %v414_v41, %v412_v40  ;;  %v364_v46 = vld [vmem:[#allocation14] sm:$0x3]  ;;  %v642_v50 = vld [vmem:[#allocation15] ss:$0 sm:$0xff]  ;;  %v263_v9 = vld [vmem:[#allocation12] sm:$0x3] }
  0xc0   :  { %694 = vmatprep.subr.bf16.mxu1 %v693_v27  ;;  %v378_v48 = vrot.slane %v364_v46, %v267_v45  ;;  %v401_v49 = vrot.slane %v364_v46, %v271_v47  ;;  %v268_v10 = vrot.slane %v263_v9, %v267_v45  ;;  %v272_v11 = vrot.slane %v263_v9, %v271_v47  ;;  %v416_v16 = vld [vmem:[#allocation18] sm:$0x3] }
  0xc1   :  { %685 = vmatpush3.bf16.msra.mxu0 %v684_v20  ;;  %735 = vset.pattern.permute.xlu0 %v1010_v3  ;;  %v421_v18 = vrot.slane %v416_v16, %v267_v45  ;;  %v425_v19 = vrot.slane %v416_v16, %v271_v47 }
  0xc2   :  { %686 = vmatprep.subr.bf16.mxu0 %v1006_v0  ;;  %v638_v0 = vld [vmem:[#allocation9] ss:$0 sm:$0xff] }
  0xc3   :  { %696 = vmatpush1.bf16.msra.mxu1 %v695_v30 }
  0xc4   :  { %698 = vmatprep.subr.bf16.mxu1 %v697_v33 }
  0xc5   :  { %688 = vmatpush3.bf16.msra.mxu0 %v687_v23 }
  0xc6   :  { %706 = vmatprep.subr.bf16.mxu0 %v697_v33 }
  0xc8   :  { %675 = vmatmul.mubr.msk.f32.vlgmr.msra.gmra.mrb[0].mxu0 %vm180_vm1, %v164_v24 }
  0xc9   :  { %590 = vmatprep.mubr.f32.mxu0 %v1008_v1  ;;  %708 = vmatpush1.bf16.msra.mxu0 %v699_v36 }
  0xca   :  { %710 = vmatprep.subr.bf16.mxu0 %v701_v39 }
  0xcd   :  { %712 = vmatpush1.bf16.msra.mxu0 %v703_v42 }
 0x138   :  { %v368_v51 = vpop.permute.xlu0 %367 }
 0x139   :  { %v379_v52 = vmul.f32 %v378_v48, %v368_v51  ;;  %v392_v53 = vpop.permute.xlu1 %391 }
 0x13a   :  { %v402_v54 = vmul.f32 %v401_v49, %v392_v53 }
 0x13b   :  { %v388_v55 = vadd.f32 %v642_v50, %v379_v52 }
 0x13c   :  { %v373_v56 = vpop.permute.xlu0 %372 }
 0x13d   :  { %v404_v57 = vadd.f32 %v402_v54, %v388_v55  ;;  %v380_v58 = vmul.f32 %v378_v48, %v373_v56  ;;  %v396_v59 = vpop.permute.xlu1 %395 }
 0x13e   :  { %v403_v60 = vmul.f32 %v401_v49, %v396_v59 }
 0x13f   :  { %v389_v61 = vadd.f32 %v642_v50, %v380_v58  ;;  %v406_v6 = vmax.f32 %v404_v57, 0.0 }
 0x141   :  { %v405_v62 = vadd.f32 %v403_v60, %v389_v61 }
 0x143   :  { %v407_v63 = vmax.f32 %v405_v62, 0.0 }
 0x145   :  { %646 = vmatmul.mubr.msk.f32.vlgmr.msra.gmra.mrb[2].mxu0 %vm275_vm2, %v407_v63 }
 0x19b   :  { %v250_v2 = vpop.f32.mrb[0].mxu0 }
 0x19c   :  { %v251_v3 = vadd.f32 %v638_v0, %v250_v2  ;;  %v676_v4 = vpop.f32.mrb[1].mxu0 }
 0x19e   :  { %v254_v5 = vmax.f32 %v251_v3, 0.0 }
 0x1a0   :  { %640 = vmatmul.mubr.msk.f32.vlgmr.msra.gmra.mrb[0].mxu1 %vm275_vm2, %v254_v5 }
 0x1a1   :  { %700 = vmatpush1.bf16.msra.mxu1 %v699_v36  ;;  %496 = vmatprep.mubr.f32.mxu1 %v1008_v1 }
 0x1a2   :  { %702 = vmatprep.subr.bf16.mxu1 %v701_v39 }
 0x1a5   :  { %704 = vmatpush1.bf16.msra.mxu1 %v703_v42 }
 0x1a8   :  { %643 = vmatmul.mubr.msk.f32.vlgmr.msra.gmra.mrb[2].mxu1 %vm275_vm2, %v406_v6 }
 0x218   :  { %v592_v7 = vpop.f32.mrb[2].mxu0 }
 0x219   :  { %v594_v8 = vpop.f32.mrb[3].mxu0  ;;  %v593_v25 = vadd.f32 %v592_v7, %v421_v18 }
 0x21a   :  { %v595_v29 = vadd.f32 %v594_v8, %v425_v19 }
 0x273   :  { %v345_v12 = vpop.f32.mrb[0].mxu1 }
 0x274   :  { %v346_v13 = vadd.f32 %v345_v12, %v268_v10  ;;  %v347_v14 = vpop.f32.mrb[1].mxu1 }
 0x275   :  { %v348_v15 = vadd.f32 %v347_v14, %v272_v11 }
 0x277   :  { %v352_v17 = vcombine.low %v346_v13, %v348_v15 }
 0x279   :  { %641 = vst.sshfl [vmem:[#allocation2] sm:$0x33 pattern:$0x76325410] %v352_v17 }
 0x27b   :  { %v498_v20 = vpop.f32.mrb[2].mxu1 }
 0x27c   :  { %v500_v1 = vpop.f32.mrb[3].mxu1  ;;  %v499_v21 = vadd.f32 %v498_v20, %v421_v18 }
 0x27d   :  { %v501_v22 = vadd.f32 %v500_v1, %v425_v19 }
 0x280   :  { %v645_v23 = vld [vmem:[#allocation2 + $0x2] ss:$0 sm:$0xff]  ;;  %v644_v24 = vld [vmem:[#allocation2] ss:$0 sm:$0xff]  ;;  %v647_v28 = vld [vmem:[#allocation2 + $0x1] ss:$0 sm:$0xff] }
 0x281   :  { %v516_v26 = vmul.f32 %v645_v23, %v501_v22  ;;  %v509_v27 = vmul.f32 %v644_v24, %v499_v21  ;;  %v603_v30 = vmul.f32 %v647_v28, %v593_v25  ;;  %v648_v31 = vld [vmem:[#allocation2 + $0x3] ss:$0 sm:$0xff] }
 0x282   :  { %v610_v32 = vmul.f32 %v648_v31, %v595_v29 }
 0x283   :  { %517 = vadd.xlane.f32.xlu1 %v516_v26  ;;  %510 = vadd.xlane.f32.xlu0 %v509_v27 }
 0x287   :  { %604 = vadd.xlane.f32.xlu0 %v603_v30 }
 0x28b   :  { %611 = vadd.xlane.f32.xlu0 %v610_v32 }
 0x310   :  { %v518_v33 = vpop.xlane.xlu1 %517  ;;  %v511_v34 = vpop.xlane.xlu0 %510 }
 0x311   :  { %v520_v35 = vsel %vm519_vm3, %v511_v34, %v518_v33 }
 0x312   :  { %522 = vst.msk [vmem:[#allocation20] sm:$0xff] %vm521_vm4, %v520_v35 }
 0x314   :  { %v605_v36 = vpop.xlane.xlu0 %604 }
 0x318   :  { %v612_v37 = vpop.xlane.xlu0 %611 }
 0x319   :  { %v613_v38 = vsel %vm519_vm3, %v605_v36, %v612_v37 }
 0x31a   :  { %615 = vst.msk [vmem:[#allocation20 + $0x8] sm:$0xff] %vm521_vm4, %v613_v38 }
 0x31b   :  { %967 = shalt.err (!%p964_p0)
}
 0x31c   :  { %s968_s29 = scalar_lea.hbm %s1228_s10, 256 }
 0x31d   :  { %p969_p1 = scmp.ne.s32.totalorder %s1228_s10, %s968_s29  ;;  %p972_p2 = scmp.lt.u32.totalorder %s968_s29, %s1228_s10 }
 0x31f   :  { %p974_p3 = pnand %p972_p2, %p969_p1 }
 0x321   :  { %977 = shalt.err (!%p974_p3)
}
 0x322   :  { %627 = dma.vmem_to_hbm [thread:$0]  %s622_s15, 256, %s1228_s10, [#allocation5], %s993_s23, %s993_s23, %s994_s24  }
 0x323   :  { %990 = dma.done.wait [#allocation5], 256  }
 0x324   :  { %991 = vsyncadd [#allocation5], 4294967040 }
 0x325   :  { %631 = vsyncpa [#allocation4], 1 }
 0x326   :  { %632 = vsyncpa [#allocation7], 1 }
 0x327   :  { %633 = vsyncpa [#allocation10], 1 }
 0x328   :  { %634 = vsyncpa [#allocation13], 1 }
 0x329   :  { %635 = vsyncpa [#allocation16], 1 }
 0x32a   :  { %636 = vsyncpa [#allocation19], 1 }
 0x32b   :  { %637 = vsyncpa [#allocation5], 1 }

</bundles_post_ra>
